<compile_context>
chip_gen: v6e
topology: v6e:2x2x1
jax: 0.10.0
libtpu: 0.0.40
codegen_flags: <defaults>
</compile_context>

<pallas_src>
import jax
import jax.numpy as jnp
from jax.experimental import pallas as pl
from jax.experimental.pallas import tpu as pltpu

NDF = 32          # cfg.MODEL.LM_DF_DIM (synthetic)
IN_DIM = 56       # landmark vector length (fixed in module)


# ----------------------------- Pallas kernel ------------------------------ #
def lm_enc_kernel(x_ref, w1_ref, b1_ref, w2_ref, b2_ref, o_ref):
    # x_ref:  (TB, 56)       VMEM  f32    (streamed per grid step)
    # w1_ref: (56, 2*ndf)    VMEM  bf16   (spectral-normalized, transposed; resident)
    # b1_ref: (1, 2*ndf)     VMEM  f32
    # w2_ref: (2*ndf, ndf)   VMEM  bf16
    # b2_ref: (1, ndf)       VMEM  f32
    # o_ref:  (TB, ndf)      VMEM  f32 (default)
    x = x_ref[...].astype(jnp.bfloat16)            # cast in-kernel (no extra HBM pass)

    # Layer 1: Linear(56 -> 2*ndf) on the MXU, f32 accumulation.
    h = jnp.dot(x, w1_ref[...], preferred_element_type=jnp.float32)
    h = h + b1_ref[...]
    h = jnp.maximum(h, 0.2 * h)                    # LeakyReLU(0.2), f32 VPU

    # Layer 2: Linear(2*ndf -> ndf).
    y = jnp.dot(h.astype(jnp.bfloat16), w2_ref[...],
                preferred_element_type=jnp.float32)
    y = y + b2_ref[...]
    y = jnp.maximum(y, 0.2 * y)                    # LeakyReLU(0.2)

    o_ref[...] = y.astype(o_ref.dtype)


def lm_enc_pallas(x, w1_t, b1, w2_t, b2, *, block_b=8192, out_dtype=jnp.float32):
    B, in_dim = x.shape
    ndf2 = w1_t.shape[1]
    ndf = w2_t.shape[1]

    # Batch tile: multiple of 8 sublanes; cap so the grid has >= 2 steps when
    # B > 8 (v7x has 2 TensorCores sharding the "parallel" axis); never exceed
    # the 8-rounded batch (single ragged block for tiny batches).
    preferred = max(8, (block_b // 8) * 8)
    if B > 8:
        half = ((pl.cdiv(B, 2) + 7) // 8) * 8
        preferred = min(preferred, half)
    tb = min(preferred, ((B + 7) // 8) * 8)
    grid = (pl.cdiv(B, tb),)

    cost = pl.CostEstimate(
        flops=2 * B * (in_dim * ndf2 + ndf2 * ndf),
        transcendentals=0,
        bytes_accessed=(B * (in_dim * 4 + ndf * 4)
                        + (in_dim * ndf2 + ndf2 * ndf) * 2
                        + (ndf2 + ndf) * 4),
    )

    out = pl.pallas_call(
        lm_enc_kernel,
        out_shape=jax.ShapeDtypeStruct((B, ndf), out_dtype),
        grid_spec=pl.GridSpec(
            grid=grid,
            in_specs=[
                pl.BlockSpec((tb, in_dim), lambda i: (i, 0)),    # x: streamed, f32
                pl.BlockSpec((in_dim, ndf2), lambda i: (0, 0)),  # weights: resident bf16
                pl.BlockSpec((1, ndf2), lambda i: (0, 0)),       # biases: resident f32
                pl.BlockSpec((ndf2, ndf), lambda i: (0, 0)),
                pl.BlockSpec((1, ndf), lambda i: (0, 0)),
            ],
            out_specs=pl.BlockSpec((tb, ndf), lambda i: (i, 0)),
        ),
        compiler_params=pltpu.CompilerParams(
            dimension_semantics=("parallel",)),
        cost_estimate=cost,
    )(x, w1_t, b1, w2_t, b2)

    return out


# --------------------------- parameter setup ------------------------------ #
def spectral_normalize(w, key, n_iter=5):
    """Approximate PyTorch SpectralNorm: W / sigma_max(W) via power iteration.
    w: (out_features, in_features). Plain-JAX glue, not the hot path.
    TODO(synk): PyTorch keeps a persistent u buffer updated once per forward;
    this fresh multi-step power iteration differs slightly from that state."""
    u = jax.random.normal(key, (w.shape[0],), dtype=w.dtype)
    u = u / (jnp.linalg.norm(u) + 1e-12)
    for _ in range(n_iter):
        v = w.T @ u
        v = v / (jnp.linalg.norm(v) + 1e-12)
        u = w @ v
        u = u / (jnp.linalg.norm(u) + 1e-12)
    sigma = u @ (w @ v)
    return w / sigma


def make_params(key, ndf=NDF):
    """Build kernel-ready params once: bf16 (in, out) weights, f32 2-D biases.
    Doing the dtype/layout prep here (not per forward call) avoids dispatching
    tiny cast ops alongside every pallas_call."""
    k1, k2, k3, k4, k5, k6 = jax.random.split(key, 6)

    # PyTorch nn.Linear default init: U(-1/sqrt(fan_in), 1/sqrt(fan_in))
    def lin_init(kw, kb, fan_in, fan_out):
        bound = 1.0 / jnp.sqrt(fan_in)
        w = jax.random.uniform(kw, (fan_out, fan_in), jnp.float32, -bound, bound)
        b = jax.random.uniform(kb, (fan_out,), jnp.float32, -bound, bound)
        return w, b

    w1, b1 = lin_init(k1, k2, IN_DIM, ndf * 2)     # Linear(56, 2*ndf)
    w2, b2 = lin_init(k3, k4, ndf * 2, ndf)        # Linear(2*ndf, ndf)
    w1 = spectral_normalize(w1, k5)
    w2 = spectral_normalize(w2, k6)
    # transpose to (in, out), cast weights to bf16 once; biases f32 2-D.
    return (w1.T.astype(jnp.bfloat16), b1.reshape(1, -1).astype(jnp.float32),
            w2.T.astype(jnp.bfloat16), b2.reshape(1, -1).astype(jnp.float32))


def lm_enc_ref(x, w1_t, b1, w2_t, b2):
    """Pure-JAX reference matching the kernel's bf16-input / f32-accum math."""
    h = jnp.dot(x.astype(jnp.bfloat16), w1_t,
                preferred_element_type=jnp.float32) + b1
    h = jnp.maximum(h, 0.2 * h)
    y = jnp.dot(h.astype(jnp.bfloat16), w2_t,
                preferred_element_type=jnp.float32) + b2
    return jnp.maximum(y, 0.2 * y)


# TODO(synk): GET_LOGITS (cond_judge / uncond_judge) is defined in __init__ but
# never used by LMDis.forward, so it is not part of this kernel.

if __name__ == "__main__":
    key = jax.random.PRNGKey(0)
    kx, kp = jax.random.split(key)

    w1_t, b1, w2_t, b2 = make_params(kp)

    # B=8  : single full tile.
    # B=20 : block_b=8 -> 3 grid steps with a ragged final block (no padding).
    # B=5  : batch smaller than one sublane group -> single ragged block.
    for B, blk in ((8, 8192), (20, 8), (5, 8192)):
        x = jax.random.normal(jax.random.fold_in(kx, B), (B, IN_DIM),
                              dtype=jnp.float32)
        out = jax.block_until_ready(
            lm_enc_pallas(x, w1_t, b1, w2_t, b2, block_b=blk))
        ref = lm_enc_ref(x, w1_t, b1, w2_t, b2)
        assert out.shape == (B, NDF)
        assert jnp.allclose(out, ref, atol=1e-3, rtol=1e-3), \
            f"mismatch vs JAX reference at B={B}"

    print("KERNEL_OK")
</pallas_src>

<mosaic_0001>
module attributes {stable_mosaic.version = 11 : i64} {
  func.func @lm_enc_kernel(%arg0: i32, %arg1: memref<8x56xf32, #tpu.memory_space<vmem>>, %arg2: memref<56x64xbf16, #tpu.memory_space<vmem>>, %arg3: memref<1x64xf32, #tpu.memory_space<vmem>>, %arg4: memref<64x32xbf16, #tpu.memory_space<vmem>>, %arg5: memref<1x32xf32, #tpu.memory_space<vmem>>, %arg6: memref<8x32xf32, #tpu.memory_space<vmem>>) attributes {dimension_semantics = [#tpu.dimension_semantics<parallel>], iteration_bounds = array<i64: 1>, scalar_prefetch = 0 : i64, scratch_operands = 0 : i64, tpu.core_type = #tpu.core_type<tc>, window_params = [{transform_indices = @transform_0, window_bounds = array<i64: 8, 56>}, {pipeline_mode = #tpu.pipeline_mode<synchronous>, transform_indices = @transform_1, window_bounds = array<i64: 56, 64>}, {pipeline_mode = #tpu.pipeline_mode<synchronous>, transform_indices = @transform_2, window_bounds = array<i64: 1, 64>}, {pipeline_mode = #tpu.pipeline_mode<synchronous>, transform_indices = @transform_3, window_bounds = array<i64: 64, 32>}, {pipeline_mode = #tpu.pipeline_mode<synchronous>, transform_indices = @transform_4, window_bounds = array<i64: 1, 32>}, {transform_indices = @transform_5, window_bounds = array<i64: 8, 32>}]} {
    %c0 = arith.constant 0 : index
    %c0_0 = arith.constant 0 : index
    %0 = vector.load %arg1[%c0, %c0_0] : memref<8x56xf32, #tpu.memory_space<vmem>>, vector<8x56xf32>
    %1 = arith.truncf %0 : vector<8x56xf32> to vector<8x56xbf16>
    %c0_1 = arith.constant 0 : index
    %c0_2 = arith.constant 0 : index
    %2 = vector.load %arg2[%c0_1, %c0_2] : memref<56x64xbf16, #tpu.memory_space<vmem>>, vector<56x64xbf16>
    %cst = arith.constant dense<0.000000e+00> : vector<8x64xf32>
    %3 = tpu.matmul %1, %2, %cst {dimension_numbers = #tpu.dot_dimension_numbers<[1], [0], [0], [1], [0, 0, 1, 1], [], []>} : vector<8x56xbf16>, vector<56x64xbf16>, vector<8x64xf32> -> vector<8x64xf32>
    %c0_3 = arith.constant 0 : index
    %c0_4 = arith.constant 0 : index
    %4 = vector.load %arg3[%c0_3, %c0_4] : memref<1x64xf32, #tpu.memory_space<vmem>>, vector<1x64xf32>
    %5 = vector.broadcast %4 : vector<1x64xf32> to vector<8x64xf32>
    %6 = arith.addf %3, %5 : vector<8x64xf32>
    %cst_5 = arith.constant 2.000000e-01 : f32
    %7 = vector.broadcast %cst_5 : f32 to vector<8x64xf32>
    %8 = arith.mulf %7, %6 : vector<8x64xf32>
    %9 = arith.maximumf %6, %8 : vector<8x64xf32>
    %10 = arith.truncf %9 : vector<8x64xf32> to vector<8x64xbf16>
    %c0_6 = arith.constant 0 : index
    %c0_7 = arith.constant 0 : index
    %11 = vector.load %arg4[%c0_6, %c0_7] : memref<64x32xbf16, #tpu.memory_space<vmem>>, vector<64x32xbf16>
    %cst_8 = arith.constant dense<0.000000e+00> : vector<8x32xf32>
    %12 = tpu.matmul %10, %11, %cst_8 {dimension_numbers = #tpu.dot_dimension_numbers<[1], [0], [0], [1], [0, 0, 1, 1], [], []>} : vector<8x64xbf16>, vector<64x32xbf16>, vector<8x32xf32> -> vector<8x32xf32>
    %c0_9 = arith.constant 0 : index
    %c0_10 = arith.constant 0 : index
    %13 = vector.load %arg5[%c0_9, %c0_10] : memref<1x32xf32, #tpu.memory_space<vmem>>, vector<1x32xf32>
    %14 = vector.broadcast %13 : vector<1x32xf32> to vector<8x32xf32>
    %15 = arith.addf %12, %14 : vector<8x32xf32>
    %cst_11 = arith.constant 2.000000e-01 : f32
    %16 = vector.broadcast %cst_11 : f32 to vector<8x32xf32>
    %17 = arith.mulf %16, %15 : vector<8x32xf32>
    %18 = arith.maximumf %15, %17 : vector<8x32xf32>
    %c0_12 = arith.constant 0 : index
    %c0_13 = arith.constant 0 : index
    %19 = vector.load %arg6[%c0_12, %c0_13] : memref<8x32xf32, #tpu.memory_space<vmem>>, vector<8x32xf32>
    tpu.vector_store %arg6[%c0_12, %c0_13], %18 {strides = array<i32>} : memref<8x32xf32, #tpu.memory_space<vmem>>, vector<8x32xf32>,
    return
  }
  func.func @transform_0(%arg0: i32) -> (i32, i32) {
    %c0_i32 = arith.constant 0 : i32
    %c0_i32_0 = arith.constant 0 : i32
    return %arg0, %c0_i32 : i32, i32
  }
  func.func @transform_1(%arg0: i32) -> (i32, i32) {
    %c0_i32 = arith.constant 0 : i32
    %c0_i32_0 = arith.constant 0 : i32
    %c0_i32_1 = arith.constant 0 : i32
    return %c0_i32, %c0_i32_0 : i32, i32
  }
  func.func @transform_2(%arg0: i32) -> (i32, i32) {
    %c0_i32 = arith.constant 0 : i32
    %c0_i32_0 = arith.constant 0 : i32
    %c0_i32_1 = arith.constant 0 : i32
    return %c0_i32, %c0_i32_0 : i32, i32
  }
  func.func @transform_3(%arg0: i32) -> (i32, i32) {
    %c0_i32 = arith.constant 0 : i32
    %c0_i32_0 = arith.constant 0 : i32
    %c0_i32_1 = arith.constant 0 : i32
    return %c0_i32, %c0_i32_0 : i32, i32
  }
  func.func @transform_4(%arg0: i32) -> (i32, i32) {
    %c0_i32 = arith.constant 0 : i32
    %c0_i32_0 = arith.constant 0 : i32
    %c0_i32_1 = arith.constant 0 : i32
    return %c0_i32, %c0_i32_0 : i32, i32
  }
  func.func @transform_5(%arg0: i32) -> (i32, i32) {
    %c0_i32 = arith.constant 0 : i32
    %c0_i32_0 = arith.constant 0 : i32
    return %arg0, %c0_i32 : i32, i32
  }
}

</mosaic_0001>

<bundles_post_ra>
// kernel: tpu_custom_call.1
= control target key start
LH: loop header
LB: loop body
LE: loop exit
PB: predicated region body
PF: predicated region fallthrough
CT: control target
= control target key end

     0   :  { %vm63_vm0 = vcmask 1043456   ;;  %v290_v1 = vmov 0.0   ;;  %vm291_vm1 = vmmov 0   ;;  %s359_s0 = inlined_call_operand.vmem [shape: f32[8,56], index: 0, kind: input, shape index: {}]   ;;  %s360_s1 = inlined_call_operand.vmem [shape: bf16[56,64], index: 1, kind: input, shape index: {}]   ;;  %s361_s2 = inlined_call_operand.vmem [shape: f32[1,64], index: 2, kind: input, shape index: {}]   ;;  %s362_s3 = inlined_call_operand.vmem [shape: bf16[64,32], index: 3, kind: input, shape index: {}]   ;;  %s363_s4 = inlined_call_operand.vmem [shape: f32[1,32], index: 4, kind: input, shape index: {}]   ;;  %s364_s5 = inlined_call_operand.hbm [shape: f32[8,32], index: 5, kind: output, shape index: {}]  }
   0x1   :  { %v260_v0 = vld [vmem:[%s360_s1 + $0x18] ss:$0 sps:$4 sm:$0xff]   ;;  %233 = vmatprep.subr.bf16.mxu0 %v290_v1  ;;  %245 = vmatprep.subr.bf16.mxu1 %v290_v1  ;;  %v261_v3 = vld [vmem:[%s360_s1 + $0x10] sm:$0xff]   ;;  %v262_v5 = vld [vmem:[%s360_s1 + $0x8] sm:$0xff]  }
   0x2   :  { %v65_v2 = vsel %vm63_vm0, %v260_v0, 0  ;;  %241 = vmatprep.mubr.msk.bf16.mxu0 %vm291_vm1, %v290_v1  ;;  %253 = vmatprep.mubr.msk.bf16.mxu1 %vm291_vm1, %v290_v1  ;;  %v264_v4 = vld [vmem:[%s362_s3 + $0x18] sm:$0xff]   ;;  %v265_v6 = vld [vmem:[%s362_s3 + $0x10] sm:$0xff]  }
   0x3   :  { %234 = vmatpush3.bf16.msra.mxu0 %v65_v2  ;;  %246 = vmatpush3.bf16.msra.mxu1 %v264_v4 }
   0x4   :  { %235 = vmatprep.subr.bf16.mxu0 %v290_v1  ;;  %247 = vmatprep.subr.bf16.mxu1 %v290_v1 }
   0x7   :  { %236 = vmatpush3.bf16.msra.mxu0 %v261_v3 }
   0x8   :  { %237 = vmatprep.subr.bf16.mxu0 %v290_v1 }
   0x9   :  { %10 = vsyncpa [#allocation3], 0  ;;  %v263_v7 = vld [vmem:[%s360_s1] sm:$0xff]   ;;  %248 = vmatpush3.bf16.msra.mxu1 %v265_v6  ;;  %vm59_vm2 = vcmask 457728   ;;  %v266_v10 = vld [vmem:[%s362_s3 + $0x8] sm:$0xff]   ;;  %vm149_vm3 = vcmask 523264  }
   0xa   :  { %v22_v8 = vld [vmem:[%s359_s0] sm:$0xff]  ;;  %249 = vmatprep.subr.bf16.mxu1 %v290_v1  ;;  %vm195_vm4 = vcmask 261120  }
   0xb   :  { %238 = vmatpush3.bf16.msra.mxu0 %v262_v5  ;;  %v23_v9 = vpack.c.bf16 %v22_v8, %v22_v8  ;;  %v267_v11 = vld [vmem:[%s362_s3] sm:$0xff]   ;;  %s292_s3 = smov [#allocation2]  }
   0xc   :  { %239 = vmatprep.subr.bf16.mxu0 %v290_v1  ;;  %v211_v12 = vld [vmem:[%s361_s2] ss:$0 sm:$0xff]  ;;  %s203_s13 = sshll.u32 %s292_s3, 4  ;;  %s204_s13 = int_to_ptr.vmem [resolvable:$true] %s203_s13 }
   0xd   :  { %250 = vmatpush3.bf16.msra.mxu1 %v266_v10  ;;  %v217_v21 = vld [vmem:[%s363_s4] ss:$0 sm:$0xff]  ;;  %s268_s2 = scalar_lea.vmem %s204_s13, 128  ;;  %p273_p1 = scmp.lt.s32.totalorder %s204_s13, %s204_s13 }
   0xe   :  { %251 = vmatprep.subr.bf16.mxu1 %v290_v1  ;;  %p269_p0 = scmp.ne.s32.totalorder %s204_s13, %s268_s2  ;;  %p274_p2 = scmp.lt.s32.totalorder %s268_s2, %s268_s2 }
   0xf   :  { %240 = vmatpush3.bf16.msra.mxu0 %v263_v7 }
  0x10   :  { %p275_p3 = por %p274_p2, %p273_p1 }
  0x11   :  { %252 = vmatpush3.bf16.msra.mxu1 %v267_v11 }
  0x12   :  { %242 = vmatmul.mubr.msk.bf16.vlgmr.msra.gmra.mxu0 %vm59_vm2, %v23_v9  ;;  %p276_p4 = pnand %p275_p3, %p269_p0 }
  0xd2   :  { %v101_v13 = vpop.f32.mrf.mxu0 }
  0xd3   :  { %v102_v14 = vadd.f32 %v211_v12, %v101_v13 }
  0xd4   :  { %v243_v15 = vpop.f32.mrf.mxu0 }
  0xd5   :  { %v107_v16 = vmul.f32 0.2, %v102_v14 }
  0xd6   :  { %v104_v17 = vpop.f32.mrf.mxu0 }
  0xd7   :  { %v108_v18 = vmax.f32 %v102_v14, %v107_v16 }
  0xd8   :  { %v244_v19 = vpop.f32.mrf.mxu0 }
  0xd9   :  { %v109_v20 = vpack.c.bf16 %v108_v18, %v108_v18 }
  0xdb   :  { %254 = vmatmul.mubr.msk.bf16.vlgmr.msra.gmra.mxu1 %vm149_vm3, %v109_v20 }
 0x19b   :  { %v187_v22 = vpop.f32.mrf.mxu1 }
 0x19c   :  { %v188_v23 = vadd.f32 %v217_v21, %v187_v22 }
 0x19d   :  { %v255_v24 = vpop.f32.mrf.mxu1 }
 0x19e   :  { %v193_v25 = vmul.f32 0.2, %v188_v23 }
 0x19f   :  { %v190_v26 = vpop.f32.mrf.mxu1 }
 0x1a0   :  { %v194_v27 = vmax.f32 %v188_v23, %v193_v25 }
 0x1a1   :  { %v256_v28 = vpop.f32.mrf.mxu1 }
 0x1a2   :  { %196 = vst.msk [vmem:[#allocation2] sm:$0xff] %vm195_vm4, %v194_v27 }
 0x1a3   :  { %279 = shalt.err (!%p276_p4)
}
 0x1a4   :  { %206 = dma.vmem_to_hbm [thread:$0]  %s204_s13, 128, %s364_s5, [#allocation3]  }
 0x1a5   :  { %288 = dma.done.wait [#allocation3], 128  }
 0x1a6   :  { %289 = vsyncadd [#allocation3], 4294967168 }
 0x1a7   :  { %210 = vsyncpa [#allocation3], 1 }

</bundles_post_ra>
